<compile_context>
chip_gen: v7x
topology: tpu7x:2x2x1
jax: 0.10.0
libtpu: 0.0.40
codegen_flags: <defaults>
</compile_context>

<pallas_src>
import numpy as np
import jax
import jax.numpy as jnp
from jax.experimental import pallas as pl
from jax.experimental.pallas import tpu as pltpu


def identity_kernel(x_ref, o_ref):
    # Full-tile copy of the current block: purely memory-bound, no compute.
    o_ref[...] = x_ref[...]


# Per-buffer VMEM budget for one tile (bytes).  With double-buffered input
# and output this gives ~4x this figure of live VMEM, comfortably under the
# 32 MiB scoped-VMEM default on v7x (the tightest of v5e/v6e/v7x).
_TILE_BYTES_BUDGET = 4 * 1024 * 1024


def _choose_tiles(n_rows, n_cols, itemsize):
    """Pick (row_tile, col_tile) that are layout-legal and fit the budget.

    Returns full extents when the whole array fits in one tile (no grid).
    Tiles obey the (8, 128) rule: each tiled dim is a multiple of its
    alignment (32 rows covers sub-32-bit sublane packing, 128 lanes) or is
    the full array extent.
    """
    total_bytes = n_rows * n_cols * itemsize
    if total_bytes <= _TILE_BYTES_BUDGET:
        return n_rows, n_cols  # single block, no grid

    # Prefer tiling only the lane (last) dimension: keeps stores lane-dense
    # and rows contiguous per tile.
    col_tile = max(128, (_TILE_BYTES_BUDGET // max(1, n_rows * itemsize)) // 128 * 128)
    col_tile = min(col_tile, max(128, (n_cols // 128) * 128 if n_cols >= 128 else n_cols))
    if n_rows * col_tile * itemsize <= _TILE_BYTES_BUDGET or n_rows <= 32:
        return n_rows, min(col_tile, n_cols) if n_cols < 128 else col_tile

    # Rows are large too: tile rows at a multiple of 32 (safe for packed
    # dtypes) and keep the lane tile as wide as the budget allows.
    row_tile = 256
    while row_tile > 32 and row_tile * 128 * itemsize > _TILE_BYTES_BUDGET:
        row_tile //= 2
    col_tile = max(128, (_TILE_BYTES_BUDGET // max(1, row_tile * itemsize)) // 128 * 128)
    return row_tile, col_tile


def identity_pallas(x):
    """Identity (DoNoThing.forward) via a Pallas TPU copy kernel.

    Accepts any rank; internally viewed as (rows, last_dim).
    """
    orig_shape = x.shape
    if x.ndim == 0:
        x2 = x.reshape(1, 1)
    elif x.ndim == 1:
        x2 = x.reshape(1, -1)
    elif x.ndim == 2:
        x2 = x
    else:
        x2 = x.reshape(-1, orig_shape[-1])
    N, L = x2.shape

    row_tile, col_tile = _choose_tiles(N, L, x2.dtype.itemsize)

    if row_tile >= N and col_tile >= L:
        # Small input: one block covering the whole array, no grid overhead.
        out = pl.pallas_call(
            identity_kernel,
            out_shape=jax.ShapeDtypeStruct((N, L), x2.dtype),
            in_specs=[pl.BlockSpec((N, L), lambda: (0, 0))],
            out_specs=pl.BlockSpec((N, L), lambda: (0, 0)),
        )(x2)
    elif row_tile >= N:
        # Tile only along the lane (last) dimension with lane-dense tiles.
        grid = (pl.cdiv(L, col_tile),)
        out = pl.pallas_call(
            identity_kernel,
            out_shape=jax.ShapeDtypeStruct((N, L), x2.dtype),
            grid=grid,
            in_specs=[pl.BlockSpec((N, col_tile), lambda j: (0, j))],
            out_specs=pl.BlockSpec((N, col_tile), lambda j: (0, j)),
            compiler_params=pltpu.CompilerParams(
                dimension_semantics=("parallel",)),
        )(x2)
    else:
        # Very large 2-D view: tile both rows and lanes.
        grid = (pl.cdiv(N, row_tile), pl.cdiv(L, col_tile))
        out = pl.pallas_call(
            identity_kernel,
            out_shape=jax.ShapeDtypeStruct((N, L), x2.dtype),
            grid=grid,
            in_specs=[pl.BlockSpec((row_tile, col_tile), lambda i, j: (i, j))],
            out_specs=pl.BlockSpec((row_tile, col_tile), lambda i, j: (i, j)),
            compiler_params=pltpu.CompilerParams(
                dimension_semantics=("parallel", "parallel")),
        )(x2)

    return out.reshape(orig_shape)


def donothing_forward(x):
    """Host-side wrapper matching DoNoThing.forward(x) -> x."""
    return identity_pallas(x)


if __name__ == "__main__":
    # Small, module-consistent shape: 8 "voices" x 2048 audio samples.
    N, L = 8, 2048
    key = jax.random.PRNGKey(0)
    x = jax.random.normal(key, (N, L), dtype=jnp.float32)

    out = donothing_forward(x)
    out = jax.block_until_ready(out)

    # Identity: output must bit-exactly equal the input.
    np.testing.assert_array_equal(np.asarray(out), np.asarray(x))

    # Also exercise the tiled (large) path once, with a non-multiple length.
    x_big = jax.random.normal(jax.random.PRNGKey(1), (8, 3 * 1024 * 1024 + 3000),
                              dtype=jnp.float32)
    out_big = jax.block_until_ready(identity_pallas(x_big))
    np.testing.assert_array_equal(np.asarray(out_big), np.asarray(x_big))

    print("KERNEL_OK")
</pallas_src>

<mosaic_0001>
module attributes {stable_mosaic.version = 11 : i64} {
  func.func @identity_kernel(%arg0: memref<8x2048xf32, #tpu.memory_space<vmem>>, %arg1: memref<8x2048xf32, #tpu.memory_space<vmem>>) attributes {dimension_semantics = [], scalar_prefetch = 0 : i64, scratch_operands = 0 : i64, tpu.core_type = #tpu.core_type<tc>} {
    %c0 = arith.constant 0 : index
    %c0_0 = arith.constant 0 : index
    %0 = vector.load %arg0[%c0, %c0_0] : memref<8x2048xf32, #tpu.memory_space<vmem>>, vector<8x2048xf32>
    %c0_1 = arith.constant 0 : index
    %c0_2 = arith.constant 0 : index
    %1 = vector.load %arg1[%c0_1, %c0_2] : memref<8x2048xf32, #tpu.memory_space<vmem>>, vector<8x2048xf32>
    tpu.vector_store %arg1[%c0_1, %c0_2], %0 {strides = array<i32>} : memref<8x2048xf32, #tpu.memory_space<vmem>>, vector<8x2048xf32>,
    return
  }
}

</mosaic_0001>

<bundles_post_ra>
// kernel: tpu_custom_call.1
= control target key start
LH: loop header
LB: loop body
LE: loop exit
PB: predicated region body
PF: predicated region fallthrough
CT: control target
= control target key end

     0   :  { %6 = vsyncpa [#allocation3], 0  ;;  %s154_s0 = inlined_call_operand.hbm [shape: f32[8,2048], index: 0, kind: input, shape index: {}]   ;;  %s155_s1 = inlined_call_operand.hbm [shape: f32[8,2048], index: 1, kind: output, shape index: {}]  }
   0x1   :  { %7 = vsyncpa [#allocation4], 0  ;;  %s118_s6 = smov [#allocation2]   ;;  %s70_s10 = scalar_lea.hbm %s154_s0, 2048 }
   0x2   :  { %s14_s7 = sshll.u32 %s118_s6, 4  ;;  %p71_p0 = scmp.ne.s32.totalorder %s154_s0, %s70_s10  ;;  %s15_s7 = int_to_ptr.vmem [resolvable:$true] %s14_s7 }
   0x3   :  { %p74_p1 = scmp.lt.u32.totalorder %s70_s10, %s154_s0 }
   0x5   :  { %p76_p2 = pnand %p74_p1, %p71_p0 }
   0x7   :  { %79 = shalt.err (!%p76_p2)
}
   0x8   :  { %s80_s15 = scalar_lea.vmem %s15_s7, 2048  ;;  %p85_p4 = scmp.lt.s32.totalorder %s15_s7, %s15_s7 }
   0x9   :  { %p81_p3 = scmp.ne.s32.totalorder %s15_s7, %s80_s15  ;;  %p86_p5 = scmp.lt.s32.totalorder %s80_s15, %s80_s15 }
   0xb   :  { %p87_p6 = por %p86_p5, %p85_p4 }
   0xd   :  { %p88_p7 = pnand %p87_p6, %p81_p3 }
   0xf   :  { %91 = shalt.err (!%p88_p7)
}
  0x10   :  { %17 = dma.hbm_to_vmem [thread:$0]  %s154_s0, 2048, %s15_s7, [#allocation3]  }
  0x11   :  { %114 = dma.done.wait [#allocation3], 2048  }
  0x12   :  { %115 = vsyncadd [#allocation3], 4294965248  ;;  %v21_v0 = vld [vmem:[#allocation2] sm:$0xff]  ;;  %v22_v1 = vld [vmem:[#allocation2 + $0x8] sm:$0xff]  ;;  %s119_s18 = smov [#allocation5]  }
  0x13   :  { %v23_v2 = vld [vmem:[#allocation2 + $0x10] sm:$0xff]  ;;  %37 = vst [vmem:[#allocation5] sm:$0xff] %v21_v0  ;;  %38 = vst [vmem:[#allocation5 + $0x8] sm:$0xff] %v22_v1  ;;  %v24_v3 = vld [vmem:[#allocation2 + $0x18] sm:$0xff]  ;;  %s59_s19 = sshll.u32 %s119_s18, 4  ;;  %s60_s19 = int_to_ptr.vmem [resolvable:$true] %s59_s19 }
  0x14   :  { %39 = vst [vmem:[#allocation5 + $0x10] sm:$0xff] %v23_v2  ;;  %v25_v4 = vld [vmem:[#allocation2 + $0x20] sm:$0xff]  ;;  %v26_v5 = vld [vmem:[#allocation2 + $0x28] sm:$0xff]  ;;  %40 = vst [vmem:[#allocation5 + $0x18] sm:$0xff] %v24_v3  ;;  %s92_s0 = scalar_lea.vmem %s60_s19, 2048  ;;  %p97_p9 = scmp.lt.s32.totalorder %s60_s19, %s60_s19 }
  0x15   :  { %41 = vst [vmem:[#allocation5 + $0x20] sm:$0xff] %v25_v4  ;;  %42 = vst [vmem:[#allocation5 + $0x28] sm:$0xff] %v26_v5  ;;  %v27_v6 = vld [vmem:[#allocation2 + $0x30] sm:$0xff]  ;;  %v28_v7 = vld [vmem:[#allocation2 + $0x38] sm:$0xff]  ;;  %p93_p8 = scmp.ne.s32.totalorder %s60_s19, %s92_s0  ;;  %p98_p10 = scmp.lt.s32.totalorder %s92_s0, %s92_s0 }
  0x16   :  { %v29_v8 = vld [vmem:[#allocation2 + $0x40] sm:$0xff]  ;;  %43 = vst [vmem:[#allocation5 + $0x30] sm:$0xff] %v27_v6  ;;  %44 = vst [vmem:[#allocation5 + $0x38] sm:$0xff] %v28_v7  ;;  %v30_v9 = vld [vmem:[#allocation2 + $0x48] sm:$0xff] }
  0x17   :  { %45 = vst [vmem:[#allocation5 + $0x40] sm:$0xff] %v29_v8  ;;  %v31_v10 = vld [vmem:[#allocation2 + $0x50] sm:$0xff]  ;;  %v32_v11 = vld [vmem:[#allocation2 + $0x58] sm:$0xff]  ;;  %46 = vst [vmem:[#allocation5 + $0x48] sm:$0xff] %v30_v9  ;;  %p99_p11 = por %p98_p10, %p97_p9 }
  0x18   :  { %47 = vst [vmem:[#allocation5 + $0x50] sm:$0xff] %v31_v10  ;;  %48 = vst [vmem:[#allocation5 + $0x58] sm:$0xff] %v32_v11  ;;  %v33_v12 = vld [vmem:[#allocation2 + $0x60] sm:$0xff]  ;;  %v34_v13 = vld [vmem:[#allocation2 + $0x68] sm:$0xff] }
  0x19   :  { %v35_v14 = vld [vmem:[#allocation2 + $0x70] sm:$0xff]  ;;  %49 = vst [vmem:[#allocation5 + $0x60] sm:$0xff] %v33_v12  ;;  %50 = vst [vmem:[#allocation5 + $0x68] sm:$0xff] %v34_v13  ;;  %v36_v15 = vld [vmem:[#allocation2 + $0x78] sm:$0xff]  ;;  %p100_p12 = pnand %p99_p11, %p93_p8 }
  0x1a   :  { %51 = vst [vmem:[#allocation5 + $0x70] sm:$0xff] %v35_v14  ;;  %52 = vst [vmem:[#allocation5 + $0x78] sm:$0xff] %v36_v15 }
  0x1b   :  { %103 = shalt.err (!%p100_p12)
}
  0x1c   :  { %s104_s22 = scalar_lea.hbm %s155_s1, 2048 }
  0x1d   :  { %p105_p13 = scmp.ne.s32.totalorder %s155_s1, %s104_s22  ;;  %p108_p0 = scmp.lt.u32.totalorder %s104_s22, %s155_s1 }
  0x1f   :  { %p110_p1 = pnand %p108_p0, %p105_p13 }
  0x21   :  { %113 = shalt.err (!%p110_p1)
}
  0x22   :  { %62 = dma.vmem_to_hbm [thread:$0]  %s60_s19, 2048, %s155_s1, [#allocation4]  }
  0x23   :  { %116 = dma.done.wait [#allocation4], 2048  }
  0x24   :  { %117 = vsyncadd [#allocation4], 4294965248 }
  0x25   :  { %66 = vsyncpa [#allocation3], 1 }
  0x26   :  { %67 = vsyncpa [#allocation4], 1 }

</bundles_post_ra>
